<compile_context>
chip_gen: v7x
topology: tpu7x:2x2x1
jax: 0.10.0
libtpu: 0.0.40
codegen_flags: <defaults>
</compile_context>

<pallas_src>
import functools
import math

import jax
import jax.numpy as jnp
from jax import lax
from jax.experimental import pallas as pl
from jax.experimental.pallas import tpu as pltpu


def _arc_margin_kernel(label_ref, inv_x_ref, x_ref, w_ref, o_ref, *,
                       s, cos_m, sin_m, th, mm, ls_eps, easy_margin,
                       block_n, out_features):
    """label_ref/inv_x_ref: (bm,1); x_ref: (bm,K); w_ref: (bn,K); o_ref: (bm,bn)."""
    j = pl.program_id(1)

    # Native-dtype MXU matmul: contract the feature axis of both tiles directly
    # (mk,nk->mn), accumulate in f32. No operand upcast, no operand transpose.
    dots = lax.dot_general(
        x_ref[...], w_ref[...],
        dimension_numbers=(((1,), (1,)), ((), ())),
        preferred_element_type=jnp.float32)                     # (bm, bn) f32

    # Per-class inverse norms from the weight tile already resident in VMEM
    # (visited once per (i, j); no extra HBM pass over W).
    wf = w_ref[...].astype(jnp.float32)
    inv_w = lax.rsqrt(jnp.maximum(
        jnp.sum(wf * wf, axis=-1, keepdims=True), 1e-24))       # (bn, 1)

    # Row norms commute with the matmul: scale the small (bm, bn) output tile
    # instead of re-normalizing the (bm,K)/(bn,K) operands every grid step.
    cosine = dots * inv_x_ref[...] * inv_w.T

    # Clamp guards against |cosine| exceeding 1 by a few ULPs (MXU/f32 rounding).
    sine = jnp.sqrt(jnp.maximum(1.0 - cosine * cosine, 0.0))
    phi = cosine * cos_m - sine * sin_m
    if easy_margin:
        phi = jnp.where(cosine > 0.0, phi, cosine)
    else:
        phi = jnp.where(cosine > th, phi, cosine - mm)

    # One-hot without scatter: local column index == (label - tile column offset).
    labels_local = label_ref[...] - j * block_n                 # (bm, 1) int32
    cols = lax.broadcasted_iota(jnp.int32, cosine.shape, 1)
    is_target = cols == labels_local
    if ls_eps > 0.0:
        one_hot = (1.0 - ls_eps) * is_target.astype(jnp.float32) + ls_eps / out_features
        out = one_hot * phi + (1.0 - one_hot) * cosine
    else:
        out = jnp.where(is_target, phi, cosine)

    o_ref[...] = (out * s).astype(o_ref.dtype)


# Double-buffered tile budget + scoped VMEM limit chosen to be safe on every
# generation: v7x has 64 MiB physical VMEM (32 MiB default scoped), v5e's
# default scoped limit is ~16 MiB (raised explicitly below), v6e has headroom.
_VMEM_TILE_BUDGET = 36 * 1024 * 1024
_VMEM_LIMIT_BYTES = 48 * 1024 * 1024


def _tile_bytes(bm, bn, K, x_it, w_it, o_it):
    # Pallas double-buffers every pipelined operand: label + inv_x + x + w + out.
    return 2 * (bm * K * x_it + bn * K * w_it + bm * bn * o_it + 2 * bm * 4)


def arc_margin_product(x, weight, label, *, s=30.0, m=0.5,
                       easy_margin=False, ls_eps=0.0,
                       out_dtype=jnp.float32):
    """ArcMarginProduct forward. x:(B,K), weight:(O,K), label:(B,) -> (B,O)."""
    B, K = x.shape
    O, K_w = weight.shape
    assert K == K_w, (K, K_w)

    cos_m, sin_m = math.cos(m), math.sin(m)
    th = math.cos(math.pi - m)
    mm = math.sin(math.pi - m) * m

    x_it = jnp.dtype(x.dtype).itemsize
    w_it = jnp.dtype(weight.dtype).itemsize
    o_it = jnp.dtype(out_dtype).itemsize

    # bn: lane-dense multiple-of-128 output tiles (full extent when O is small).
    bn = O if O <= 256 else 256

    # bm: as close to B as the VMEM budget allows, so the (usually dominant)
    # O x K weight matrix streams from HBM ceil(B/bm) times -- ideally once.
    if _tile_bytes(B, bn, K, x_it, w_it, o_it) <= _VMEM_TILE_BUDGET:
        bm = B
    else:
        fixed = 2 * bn * K * w_it
        per_row = 2 * (K * x_it + bn * o_it + 8)
        bm_max = max(8, (_VMEM_TILE_BUDGET - fixed) // per_row)
        bm_max = min(bm_max, B)
        if bm_max >= B:
            bm = B
        elif bm_max >= 128:
            bm = (bm_max // 128) * 128    # keep layout-legal multiples of 128
        else:
            bm = max(8, (bm_max // 8) * 8)

    grid = (pl.cdiv(B, bm), pl.cdiv(O, bn))

    label_col = label.reshape(B, 1).astype(jnp.int32)
    # Hoisted per-row inverse norms of the input (one tiny extra pass over x);
    # keeps both grid axes dependency-free so they stay "parallel" (megacore).
    inv_x = lax.rsqrt(jnp.maximum(
        jnp.sum(jnp.square(x.astype(jnp.float32)), axis=-1, keepdims=True),
        1e-24))

    kernel = functools.partial(
        _arc_margin_kernel,
        s=float(s), cos_m=cos_m, sin_m=sin_m, th=th, mm=mm,
        ls_eps=float(ls_eps), easy_margin=bool(easy_margin),
        block_n=bn, out_features=O)

    cost = pl.CostEstimate(
        flops=int(2 * B * O * K + 12 * B * O + 3 * O * K),
        transcendentals=int(B * O + O),
        bytes_accessed=int(x.size * x_it + weight.size * w_it
                           + 8 * B + B * O * o_it))

    return pl.pallas_call(
        kernel,
        out_shape=jax.ShapeDtypeStruct((B, O), out_dtype),
        grid=grid,
        in_specs=[
            pl.BlockSpec((bm, 1), lambda i, j: (i, 0)),   # labels
            pl.BlockSpec((bm, 1), lambda i, j: (i, 0)),   # 1 / ||x_row||
            pl.BlockSpec((bm, K), lambda i, j: (i, 0)),   # input rows (full K)
            pl.BlockSpec((bn, K), lambda i, j: (j, 0)),   # weight rows (full K)
        ],
        out_specs=pl.BlockSpec((bm, bn), lambda i, j: (i, j)),
        compiler_params=pltpu.CompilerParams(
            dimension_semantics=("parallel", "parallel"),
            vmem_limit_bytes=_VMEM_LIMIT_BYTES),
        cost_estimate=cost,
    )(label_col, inv_x, x, weight)


def arc_margin_reference(x, weight, label, *, s=30.0, m=0.5,
                         easy_margin=False, ls_eps=0.0):
    cos_m, sin_m = math.cos(m), math.sin(m)
    th = math.cos(math.pi - m)
    mm = math.sin(math.pi - m) * m
    xf = x.astype(jnp.float32)
    wf = weight.astype(jnp.float32)
    xn = xf / jnp.maximum(jnp.linalg.norm(xf, axis=-1, keepdims=True), 1e-12)
    wn = wf / jnp.maximum(jnp.linalg.norm(wf, axis=-1, keepdims=True), 1e-12)
    cosine = xn @ wn.T
    sine = jnp.sqrt(jnp.maximum(1.0 - cosine * cosine, 0.0))
    phi = cosine * cos_m - sine * sin_m
    if easy_margin:
        phi = jnp.where(cosine > 0.0, phi, cosine)
    else:
        phi = jnp.where(cosine > th, phi, cosine - mm)
    one_hot = jax.nn.one_hot(label, weight.shape[0], dtype=jnp.float32)
    if ls_eps > 0.0:
        one_hot = (1.0 - ls_eps) * one_hot + ls_eps / weight.shape[0]
    return (one_hot * phi + (1.0 - one_hot) * cosine) * s


if __name__ == "__main__":
    key = jax.random.PRNGKey(0)
    k1, k2, k3, k4, k5, k6 = jax.random.split(key, 6)

    def check(y, y_ref, atol=0.2, rtol=2e-2):
        err = jnp.abs(y.astype(jnp.float32) - y_ref)
        tol = atol + rtol * jnp.abs(y_ref)
        assert bool(jnp.all(err <= tol)), float(jnp.max(err - tol))

    # --- small f32 case, default config (s=30, m=0.5) ---
    B, K, O = 8, 32, 16
    x = jax.random.normal(k1, (B, K), dtype=jnp.float32)
    limit = math.sqrt(6.0 / (K + O))    # xavier_uniform_-style init
    w = jax.random.uniform(k2, (O, K), dtype=jnp.float32,
                           minval=-limit, maxval=limit)
    label = jax.random.randint(k3, (B,), 0, O, dtype=jnp.int32)

    y = jax.block_until_ready(arc_margin_product(x, w, label))
    assert y.shape == (B, O), y.shape
    check(y, arc_margin_reference(x, w, label))

    # --- easy-margin + label-smoothing static branches ---
    y2 = jax.block_until_ready(
        arc_margin_product(x, w, label, easy_margin=True, ls_eps=0.1))
    check(y2, arc_margin_reference(x, w, label, easy_margin=True, ls_eps=0.1))

    # --- larger bf16 case: exercises the native-dtype MXU path and the grid
    #     over out_features (bn=256 with a ragged edge block). ---
    B2, K2, O2 = 160, 96, 400
    x2 = jax.random.normal(k4, (B2, K2), dtype=jnp.bfloat16)
    limit2 = math.sqrt(6.0 / (K2 + O2))
    w2 = jax.random.uniform(k5, (O2, K2), dtype=jnp.float32,
                            minval=-limit2, maxval=limit2).astype(jnp.bfloat16)
    label2 = jax.random.randint(k6, (B2,), 0, O2, dtype=jnp.int32)

    y3 = jax.block_until_ready(arc_margin_product(x2, w2, label2))
    assert y3.shape == (B2, O2), y3.shape
    check(y3, arc_margin_reference(x2, w2, label2))

    print("KERNEL_OK")
</pallas_src>

<mosaic_0001>
module attributes {stable_mosaic.version = 11 : i64} {
  func.func @_arc_margin_kernel(%arg0: i32, %arg1: i32, %arg2: memref<8x1xi32, #tpu.memory_space<vmem>>, %arg3: memref<8x1xf32, #tpu.memory_space<vmem>>, %arg4: memref<8x32xf32, #tpu.memory_space<vmem>>, %arg5: memref<16x32xf32, #tpu.memory_space<vmem>>, %arg6: memref<8x16xf32, #tpu.memory_space<vmem>>) attributes {dimension_semantics = [#tpu.dimension_semantics<parallel>, #tpu.dimension_semantics<parallel>], iteration_bounds = array<i64: 1, 1>, scalar_prefetch = 0 : i64, scratch_operands = 0 : i64, tpu.core_type = #tpu.core_type<tc>, window_params = [{transform_indices = @transform_0, window_bounds = array<i64: 8, 1>}, {transform_indices = @transform_1, window_bounds = array<i64: 8, 1>}, {transform_indices = @transform_2, window_bounds = array<i64: 8, 32>}, {transform_indices = @transform_3, window_bounds = array<i64: 16, 32>}, {transform_indices = @transform_4, window_bounds = array<i64: 8, 16>}]} {
    %c0 = arith.constant 0 : index
    %c0_0 = arith.constant 0 : index
    %0 = vector.load %arg4[%c0, %c0_0] : memref<8x32xf32, #tpu.memory_space<vmem>>, vector<8x32xf32>
    %c0_1 = arith.constant 0 : index
    %c0_2 = arith.constant 0 : index
    %1 = vector.load %arg5[%c0_1, %c0_2] : memref<16x32xf32, #tpu.memory_space<vmem>>, vector<16x32xf32>
    %cst = arith.constant dense<0.000000e+00> : vector<8x16xf32>
    %2 = tpu.matmul %0, %1, %cst {dimension_numbers = #tpu.dot_dimension_numbers<[1], [1], [0], [0], [0, 0, 1, 0], [], []>} : vector<8x32xf32>, vector<16x32xf32>, vector<8x16xf32> -> vector<8x16xf32>
    %c0_3 = arith.constant 0 : index
    %c0_4 = arith.constant 0 : index
    %3 = vector.load %arg5[%c0_3, %c0_4] : memref<16x32xf32, #tpu.memory_space<vmem>>, vector<16x32xf32>
    %4 = arith.mulf %3, %3 : vector<16x32xf32>
    %cst_5 = arith.constant dense<0.000000e+00> : vector<16xf32>
    %5 = vector.multi_reduction <add>, %4, %cst_5 [1] : vector<16x32xf32> to vector<16xf32>
    %6 = vector.shape_cast %5 : vector<16xf32> to vector<16x1xf32>
    %cst_6 = arith.constant 1.000000e-24 : f32
    %7 = vector.broadcast %cst_6 : f32 to vector<16x1xf32>
    %8 = arith.maximumf %6, %7 : vector<16x1xf32>
    %9 = math.rsqrt %8 : vector<16x1xf32>
    %c0_7 = arith.constant 0 : index
    %c0_8 = arith.constant 0 : index
    %10 = vector.load %arg3[%c0_7, %c0_8] : memref<8x1xf32, #tpu.memory_space<vmem>>, vector<8x1xf32>
    %11 = vector.broadcast %10 : vector<8x1xf32> to vector<8x16xf32>
    %12 = arith.mulf %2, %11 : vector<8x16xf32>
    %13 = tpu.transpose %9, [1, 0] : vector<16x1xf32> -> vector<1x16xf32>
    %14 = vector.broadcast %13 : vector<1x16xf32> to vector<8x16xf32>
    %15 = arith.mulf %12, %14 : vector<8x16xf32>
    %16 = arith.mulf %15, %15 : vector<8x16xf32>
    %cst_9 = arith.constant 1.000000e+00 : f32
    %17 = vector.broadcast %cst_9 : f32 to vector<8x16xf32>
    %18 = arith.subf %17, %16 : vector<8x16xf32>
    %cst_10 = arith.constant 0.000000e+00 : f32
    %19 = vector.broadcast %cst_10 : f32 to vector<8x16xf32>
    %20 = arith.maximumf %18, %19 : vector<8x16xf32>
    %21 = math.sqrt %20 : vector<8x16xf32>
    %cst_11 = arith.constant 0.87758255 : f32
    %22 = vector.broadcast %cst_11 : f32 to vector<8x16xf32>
    %23 = arith.mulf %15, %22 : vector<8x16xf32>
    %cst_12 = arith.constant 0.47942555 : f32
    %24 = vector.broadcast %cst_12 : f32 to vector<8x16xf32>
    %25 = arith.mulf %21, %24 : vector<8x16xf32>
    %26 = arith.subf %23, %25 : vector<8x16xf32>
    %cst_13 = arith.constant -0.87758255 : f32
    %27 = vector.broadcast %cst_13 : f32 to vector<8x16xf32>
    %28 = arith.cmpf ogt, %15, %27 : vector<8x16xf32>
    %cst_14 = arith.constant 0.239712775 : f32
    %29 = vector.broadcast %cst_14 : f32 to vector<8x16xf32>
    %30 = arith.subf %15, %29 : vector<8x16xf32>
    %31 = arith.select %28, %26, %30 : vector<8x16xi1>, vector<8x16xf32>
    %c0_15 = arith.constant 0 : index
    %c0_16 = arith.constant 0 : index
    %32 = vector.load %arg2[%c0_15, %c0_16] : memref<8x1xi32, #tpu.memory_space<vmem>>, vector<8x1xi32>
    %c16_i32 = arith.constant 16 : i32
    %33 = arith.muli %arg1, %c16_i32 : i32
    %34 = vector.broadcast %33 : i32 to vector<8x1xi32>
    %35 = arith.subi %32, %34 : vector<8x1xi32>
    %36 = tpu.iota {dimensions = array<i32: 1>} : vector<8x16xi32>
    %37 = vector.broadcast %35 : vector<8x1xi32> to vector<8x16xi32>
    %38 = arith.cmpi eq, %36, %37 : vector<8x16xi32>
    %39 = arith.select %38, %31, %15 : vector<8x16xi1>, vector<8x16xf32>
    %cst_17 = arith.constant 3.000000e+01 : f32
    %40 = vector.broadcast %cst_17 : f32 to vector<8x16xf32>
    %41 = arith.mulf %39, %40 : vector<8x16xf32>
    %c0_18 = arith.constant 0 : index
    %c0_19 = arith.constant 0 : index
    %42 = vector.load %arg6[%c0_18, %c0_19] : memref<8x16xf32, #tpu.memory_space<vmem>>, vector<8x16xf32>
    tpu.vector_store %arg6[%c0_18, %c0_19], %41 {strides = array<i32>} : memref<8x16xf32, #tpu.memory_space<vmem>>, vector<8x16xf32>,
    return
  }
  func.func @transform_0(%arg0: i32, %arg1: i32) -> (i32, i32) {
    %c0_i32 = arith.constant 0 : i32
    %c0_i32_0 = arith.constant 0 : i32
    return %arg0, %c0_i32 : i32, i32
  }
  func.func @transform_1(%arg0: i32, %arg1: i32) -> (i32, i32) {
    %c0_i32 = arith.constant 0 : i32
    %c0_i32_0 = arith.constant 0 : i32
    return %arg0, %c0_i32 : i32, i32
  }
  func.func @transform_2(%arg0: i32, %arg1: i32) -> (i32, i32) {
    %c0_i32 = arith.constant 0 : i32
    %c0_i32_0 = arith.constant 0 : i32
    return %arg0, %c0_i32 : i32, i32
  }
  func.func @transform_3(%arg0: i32, %arg1: i32) -> (i32, i32) {
    %c0_i32 = arith.constant 0 : i32
    %c0_i32_0 = arith.constant 0 : i32
    return %arg1, %c0_i32 : i32, i32
  }
  func.func @transform_4(%arg0: i32, %arg1: i32) -> (i32, i32) {
    %c0_i32 = arith.constant 0 : i32
    return %arg0, %arg1 : i32, i32
  }
}

</mosaic_0001>

<bundles_post_ra>
// kernel: tpu_custom_call.1
= control target key start
LH: loop header
LB: loop body
LE: loop exit
PB: predicated region body
PF: predicated region fallthrough
CT: control target
= control target key end

     0   :  { %vm21_vm0 = vcmask 261120   ;;  %v256_v4 = vmov 0.0|0.0   ;;  %vm257_vm2 = vmmov 0   ;;  %v258_v6 = vmov 0.0   ;;  %s318_s0 = inlined_call_operand.vmem [shape: s32[8,1], index: 0, kind: input, shape index: {}]   ;;  %s319_s1 = inlined_call_operand.vmem [shape: f32[8,1], index: 1, kind: input, shape index: {}]   ;;  %s320_s2 = inlined_call_operand.vmem [shape: f32[8,32], index: 2, kind: input, shape index: {}]   ;;  %s321_s3 = inlined_call_operand.vmem [shape: f32[16,32], index: 3, kind: input, shape index: {}]   ;;  %s322_s4 = inlined_call_operand.hbm [shape: f32[8,16], index: 4, kind: output, shape index: {}]  }
   0x1   :  { %v19_v0 = vld [vmem:[%s321_s3] sm:$0xff]  ;;  %v20_v1 = vld [vmem:[%s321_s3 + $0x8] sm:$0xff]  ;;  %215 = vmatprep.subr.bf16.mxu0 %v256_v4  ;;  %vm217_vm1 = vmpackc.low %vm21_vm0, %vm21_vm0  ;;  %212 = vmatprep.mubr.msk.f32.mxu0 %vm257_vm2, %v258_v6 }
   0x2   :  { %v101_v2 = vmul.f32 %v19_v0, %v19_v0  ;;  %v102_v3 = vmul.f32 %v20_v1, %v20_v1  ;;  %v216_v5 = vpack.c.bf16 %v20_v1, %v19_v0 }
   0x3   :  { %9 = vsyncpa [#allocation3], 0  ;;  %v18_v9 = vld [vmem:[%s320_s2] sm:$0xff]  ;;  %v259_v11 = vmov 0   ;;  %v152_v21 = vlaneseq  ;;  %vm185_vm7 = vcmask 130048  }
   0x4   :  { %v103_v7 = vsel %vm21_vm0, %v101_v2, 0.0  ;;  %218 = vmatpush3.bf16.xpose.msk.msra.mxu0 %vm217_vm1, %v216_v5  ;;  %v106_v8 = vsel %vm21_vm0, %v102_v3, 0.0  ;;  %v113_v10 = vld [vmem:[%s319_s1] sm:$0xff]  ;;  %224 = vset.pattern.permute.xlu1 %v259_v11 }
   0x5   :  { %104 = vadd.xlane.f32.xlu0 %v103_v7  ;;  %116 = vperm.xlu1 %224, %v113_v10   ;;  %v173_v12 = vld [vmem:[%s318_s0] sm:$0xff]  ;;  %v153_v22 = vshrl.u32 %v152_v21, 7  ;;  %v178_v37 = vand.u32 127, %v152_v21  ;;  %s260_s0 = smov [#allocation2]  }
   0x6   :  { %s193_s1 = sshll.u32 %s260_s0, 4  ;;  %s194_s1 = int_to_ptr.vmem [resolvable:$true] %s193_s1 }
   0x7   :  { %v154_v23 = vsub.s32 0, %v153_v22  ;;  %s232_s2 = scalar_lea.vmem %s194_s1, 128  ;;  %p237_p1 = scmp.lt.s32.totalorder %s194_s1, %s194_s1 }
   0x8   :  { %p233_p0 = scmp.ne.s32.totalorder %s194_s1, %s232_s2  ;;  %p238_p2 = scmp.lt.s32.totalorder %s232_s2, %s232_s2 }
   0x9   :  { %107 = vadd.xlane.f32.xlu0 %v106_v8  ;;  %180 = vperm.xlu1 %224, %v173_v12  }
   0xa   :  { %p239_p3 = por %p238_p2, %p237_p1 }
   0xb   :  { %213 = vmatmul.mubr.msk.f32.vlgmr.msra.gmra.mrb[0].mxu0 %vm21_vm0, %v18_v9 }
   0xc   :  { %p240_p4 = pnand %p239_p3, %p233_p0 }
  0x84   :  { %v117_v24 = vpop.permute.xlu1 %116 }
  0x88   :  { %v181_v40 = vpop.permute.xlu1 %180 }
  0x89   :  { %vm182_vm6 = vcmp.eq.s32.totalorder %v178_v37, %v181_v40 }
  0x92   :  { %v105_v13 = vpop.xlane.xlu0 %104 }
  0x93   :  { %v109_v14 = vmax.f32 %v105_v13, 1e-24 }
  0x95   :  { %226 = vrsqrt.f32 %v109_v14 }
  0x96   :  { %v108_v15 = vpop.xlane.xlu0 %107 }
  0x97   :  { %v110_v16 = vmax.f32 %v108_v15, 1e-24 }
  0x99   :  { %228 = vrsqrt.f32 %v110_v16 }
  0x9f   :  { %v227_v17 = vpop.eup %226 }
  0xa0   :  { %120 = vxpose.xlu0.b32.start [1/2] (short) (narrow) %v227_v17, 8 }
  0xa3   :  { %v229_v18 = vpop.eup %228 }
  0xa4   :  { %121 = vxpose.xlu0.b32.end [2/2] (short) (narrow) %v229_v18, 8 }
  0xcd   :  { %225 = vset.pattern.permute.xlu0 %v259_v11 }
  0xde   :  { %v97_v19 = vpop.f32.mrb[0].mxu0 }
  0xdf   :  { %v214_v20 = vpop.f32.mrb[1].mxu0  ;;  %v119_v25 = vmul.f32 %v117_v24, %v97_v19 }
 0x120   :  { %v136_v26 = vpop.trf.xlu0 }
 0x121   :  { %v155_v27 = vrot.slane %v136_v26, %v154_v23 }
 0x123   :  { %v156_v28 = vmul.f32 %v155_v27, %v119_v25 }
 0x125   :  { %v157_v29 = vmul.f32 %v156_v28, %v156_v28  ;;  %v167_v38 = vmul.f32 0.87758255, %v156_v28  ;;  %v204_v42 = vadd.f32 -0.23971277, %v156_v28  ;;  %vm170_vm5 = vcmp.gt.f32.partialorder %v156_v28, -0.87758255 }
 0x127   :  { %v158_v30 = vsub.f32 1.0, %v157_v29 }
 0x129   :  { %v159_v31 = vmax.f32 %v158_v30, 0.0 }
 0x12b   :  { %230 = vrsqrt.f32 %v159_v31  ;;  %vm162_vm3 = vcmp.eq.f32.partialorder %v159_v31, inf  ;;  %v165_v34 = vand.u32 2147483648, %v159_v31  ;;  %vm164_vm4 = vcmp.eq.f32.partialorder %v159_v31, 0.0 }
 0x135   :  { %v231_v32 = vpop.eup %230 }
 0x136   :  { %v161_v33 = vmul.f32 %v231_v32, %v159_v31 }
 0x138   :  { %v163_v35 = vsel %vm162_vm3, %v159_v31, %v161_v33 }
 0x139   :  { %v166_v36 = vsel %vm164_vm4, %v165_v34, %v163_v35 }
 0x13a   :  { %v168_v39 = vmul.f32 0.47942555, %v166_v36 }
 0x13c   :  { %v169_v41 = vsub.f32 %v167_v38, %v168_v39 }
 0x13e   :  { %v172_v43 = vsel %vm170_vm5, %v169_v41, %v204_v42 }
 0x13f   :  { %v183_v44 = vsel %vm182_vm6, %v172_v43, %v156_v28 }
 0x140   :  { %v184_v45 = vmul.f32 30.0, %v183_v44 }
 0x142   :  { %186 = vst.msk [vmem:[#allocation2] sm:$0xff] %vm185_vm7, %v184_v45 }
 0x143   :  { %243 = shalt.err (!%p240_p4)
}
 0x144   :  { %s244_s26 = scalar_lea.hbm %s322_s4, 128 }
 0x145   :  { %p245_p5 = scmp.ne.s32.totalorder %s322_s4, %s244_s26  ;;  %p248_p6 = scmp.lt.u32.totalorder %s244_s26, %s322_s4 }
 0x147   :  { %p250_p7 = pnand %p248_p6, %p245_p5 }
 0x149   :  { %253 = shalt.err (!%p250_p7)
}
 0x14a   :  { %196 = dma.vmem_to_hbm [thread:$0]  %s194_s1, 128, %s322_s4, [#allocation3]  }
 0x14b   :  { %254 = dma.done.wait [#allocation3], 128  }
 0x14c   :  { %255 = vsyncadd [#allocation3], 4294967168 }
 0x14d   :  { %200 = vsyncpa [#allocation3], 1 }

</bundles_post_ra>
